<compile_context>
chip_gen: v5e
topology: v5e:2x2
jax: 0.10.0
libtpu: 0.0.40
codegen_flags: <defaults>
</compile_context>

<pallas_src>
import functools

import jax
import jax.numpy as jnp
from jax.experimental import pallas as pl
from jax.experimental.pallas import tpu as pltpu


def _dosed_loss_kernel(feat_ref, tgt_ref, out_ref, *, num_cls):
    """Accumulate masked per-anchor loss partials for one lane-tile of anchors.

    feat_ref: (num_cls+4, T) float   rows [0:C]     = class logits
                                     rows [C:C+2]   = predicted localizations
                                     rows [C+2:C+4] = target localizations
    tgt_ref : (1, T) int32           class targets (0 = background, -1 = pad)
    out_ref : (8, T) float32         lane-wise per-core accumulators (resident)
              row 0: #positive
              row 1: CE * positive
              row 2: CE * negative
              row 3: smooth-L1 summed over coords * positive
    """
    @pl.when(pl.program_id(1) == 0)
    def _init():
        out_ref[...] = jnp.zeros_like(out_ref)

    tgt = tgt_ref[...]                                          # (1, T) int32
    pos = tgt > 0
    neg = tgt == 0                                              # pad (-1) is neither

    cls = feat_ref[0:num_cls, :].astype(jnp.float32)            # (C, T)
    loc = feat_ref[num_cls:num_cls + 2, :].astype(jnp.float32)  # (2, T)
    loct = feat_ref[num_cls + 2:num_cls + 4, :].astype(jnp.float32)

    # Per-anchor (per-lane) logsumexp over the class (sublane) axis: block-wise
    # VPU/EUP math with XLU sublane reductions -- no per-class unrolling.
    m = jnp.max(cls, axis=0, keepdims=True)                     # (1, T)
    p = jnp.exp(cls - m)                                        # (C, T)
    s = jnp.sum(p, axis=0, keepdims=True)                       # (1, T)
    lse = m + jnp.log(s)                                        # (1, T)

    # x[target] via one-hot select + sublane sum (targets in [0, C-1]; pad=-1
    # matches nothing -> 0, and is masked below anyway).
    cls_id = jax.lax.broadcasted_iota(jnp.int32, cls.shape, 0)  # (C, T)
    xt = jnp.sum(jnp.where(cls_id == tgt, cls, 0.0), axis=0, keepdims=True)
    ce = lse - xt                                               # (1, T)

    # Smooth L1 (beta = 1.0), pre-reduced over the 2 coordinates.
    d = loc - loct
    ad = jnp.abs(d)
    sl1 = jnp.where(ad < 1.0, 0.5 * d * d, ad - 0.5)            # (2, T)

    # Lane-wise accumulation.  jnp.where SELECTS, so padded/garbage lanes can
    # never contribute (do not rewrite as multiply-by-mask).
    out_ref[0:1, :] += pos.astype(jnp.float32)
    out_ref[1:2, :] += jnp.where(pos, ce, 0.0)
    out_ref[2:3, :] += jnp.where(neg, ce, 0.0)
    out_ref[3:4, :] += jnp.sum(jnp.where(pos, sl1, 0.0), axis=0, keepdims=True)


@functools.partial(jax.jit, static_argnames=("tile", "cores"))
def dosed_simple_loss(localizations, classifications,
                      localizations_target, classifications_target,
                      *, tile=8192, cores=2):
    """Returns (loss_cls_pos_norm, loss_cls_neg_norm, loss_loc_norm)."""
    B, N, _ = localizations.shape
    C = classifications.shape[-1]
    A = B * N

    fdt = jnp.promote_types(
        jnp.promote_types(classifications.dtype, localizations.dtype),
        localizations_target.dtype)

    # Tile = lane multiple of 128, clamped to the (padded) anchor count.
    tile = max(128, ((int(tile) + 127) // 128) * 128)
    tile = min(tile, ((A + 127) // 128) * 128)
    num_tiles = -(-A // tile)
    num_cores = max(1, min(int(cores), num_tiles))      # v7x: 2 TCs; v5e/v6e: no-op
    tiles_per_core = -(-num_tiles // num_cores)
    a_pad = num_cores * tiles_per_core * tile

    # Lane-dense relayout: anchors along lanes, one fused float slab.  Tail is
    # padded (feat -> 0, tgt -> -1) so the kernel needs no ragged-tail mask.
    feat = jnp.concatenate([
        classifications.reshape(A, C).T.astype(fdt),
        localizations.reshape(A, 2).T.astype(fdt),
        localizations_target.reshape(A, 2).T.astype(fdt),
    ], axis=0)                                                  # (C+4, A)
    feat = jnp.pad(feat, ((0, 0), (0, a_pad - A)))
    tgt = jnp.pad(classifications_target.reshape(1, A).astype(jnp.int32),
                  ((0, 0), (0, a_pad - A)), constant_values=-1)

    sums = pl.pallas_call(
        functools.partial(_dosed_loss_kernel, num_cls=C),
        out_shape=jax.ShapeDtypeStruct((num_cores, 8, tile), jnp.float32),
        grid_spec=pltpu.PrefetchScalarGridSpec(
            num_scalar_prefetch=0,
            grid=(num_cores, tiles_per_core),
            in_specs=[
                pl.BlockSpec((C + 4, tile),
                             lambda c, i: (0, c * tiles_per_core + i)),
                pl.BlockSpec((1, tile),
                             lambda c, i: (0, c * tiles_per_core + i)),
            ],
            out_specs=pl.BlockSpec((None, 8, tile), lambda c, i: (c, 0, 0)),
        ),
        compiler_params=pltpu.CompilerParams(
            dimension_semantics=("parallel", "arbitrary")),
    )(feat, tgt)

    # Tiny final cross-lane / cross-core reductions + normalization in JAX.
    n_pos = jnp.sum(sums[:, 0])
    ce_pos = jnp.sum(sums[:, 1])
    ce_neg = jnp.sum(sums[:, 2])
    loc_sum = jnp.sum(sums[:, 3])
    # Cross-entropy targets are class indices in [0, C-1], so every real anchor
    # that is not positive is negative.
    n_neg = jnp.float32(A) - n_pos

    # Matches the PyTorch module: masked sums divided by counts (0/0 -> NaN,
    # identical to the torch behaviour when no positives/negatives exist).
    return ce_pos / n_pos, ce_neg / n_neg, loc_sum / n_pos


def _reference(localizations, classifications, localizations_target,
               classifications_target):
    """Pure-JAX reference mirroring the PyTorch forward."""
    tgt = classifications_target
    pos = (tgt > 0).astype(jnp.float32)
    neg = (tgt == 0).astype(jnp.float32)
    d = localizations - localizations_target
    ad = jnp.abs(d)
    sl1 = jnp.where(ad < 1.0, 0.5 * d * d, ad - 0.5)
    loc_sum = jnp.sum(sl1 * pos[..., None])
    x = classifications.astype(jnp.float32)
    lse = jax.scipy.special.logsumexp(x, axis=-1)
    x_t = jnp.take_along_axis(x, jnp.maximum(tgt, 0)[..., None], axis=-1)[..., 0]
    ce = lse - x_t
    n_pos, n_neg = jnp.sum(pos), jnp.sum(neg)
    return (jnp.sum(ce * pos) / n_pos,
            jnp.sum(ce * neg) / n_neg,
            loc_sum / n_pos)


if __name__ == "__main__":
    root = jax.random.PRNGKey(0)
    key_a, key_b = jax.random.split(root)

    def make_inputs(key, batch, n_anchors, n_classes):
        num_logits = n_classes + 1
        k1, k2, k3, k4 = jax.random.split(key, 4)
        loc = jax.random.normal(k1, (batch, n_anchors, 2), jnp.float32)
        loct = jax.random.normal(k2, (batch, n_anchors, 2), jnp.float32)
        cls = jax.random.normal(k3, (batch, n_anchors, num_logits), jnp.float32)
        tgt = jax.random.randint(k4, (batch, n_anchors), 0, num_logits,
                                 dtype=jnp.int32)
        return loc, cls, loct, tgt

    # Small case (batch=2, anchors=16, number_of_classes=2 -> 3 logits):
    # single tile, single core.
    args = make_inputs(key_a, 2, 16, 2)
    out = jax.block_until_ready(dosed_simple_loss(*args))
    ref = _reference(*args)
    for got, want in zip(out, ref):
        assert jnp.allclose(got, want, rtol=1e-5, atol=1e-5), (got, want)

    # Ragged multi-tile / dual-"core" path: A = 1000, tile = 256 -> grid (2, 2)
    # with a padded tail, exercising the parallel core axis and accumulation.
    args2 = make_inputs(key_b, 2, 500, 2)
    out2 = jax.block_until_ready(dosed_simple_loss(*args2, tile=256))
    ref2 = _reference(*args2)
    for got, want in zip(out2, ref2):
        assert jnp.allclose(got, want, rtol=1e-5, atol=1e-5), (got, want)

    print("KERNEL_OK")
</pallas_src>

<mosaic_0001>
module attributes {stable_mosaic.version = 11 : i64} {
  func.func @_dosed_loss_kernel(%arg0: i32, %arg1: i32, %arg2: memref<7x128xf32, #tpu.memory_space<vmem>>, %arg3: memref<1x128xi32, #tpu.memory_space<vmem>>, %arg4: memref<1x8x128xf32, #tpu.memory_space<vmem>>) attributes {dimension_semantics = [#tpu.dimension_semantics<parallel>, #tpu.dimension_semantics<arbitrary>], iteration_bounds = array<i64: 1, 1>, scalar_prefetch = 0 : i64, scratch_operands = 0 : i64, tpu.core_type = #tpu.core_type<tc>, window_params = [{transform_indices = @transform_0, window_bounds = array<i64: 7, 128>}, {transform_indices = @transform_1, window_bounds = array<i64: 1, 128>}, {transform_indices = @transform_2, window_bounds = array<i64: 1, 8, 128>}]} {
    %c0_i32 = arith.constant 0 : i32
    %0 = arith.cmpi eq, %arg1, %c0_i32 : i32
    %1 = arith.extui %0 : i1 to i32
    %c0_i32_0 = arith.constant 0 : i32
    %2 = arith.cmpi ne, %1, %c0_i32_0 : i32
    scf.if %2 {
      %cst_40 = arith.constant 0.000000e+00 : f32
      %74 = vector.broadcast %cst_40 : f32 to vector<8x128xf32>
      %c0_41 = arith.constant 0 : index
      %c0_42 = arith.constant 0 : index
      %c0_43 = arith.constant 0 : index
      %75 = vector.load %arg4[%c0_41, %c0_42, %c0_43] : memref<1x8x128xf32, #tpu.memory_space<vmem>>, vector<1x8x128xf32>
      %76 = vector.shape_cast %75 : vector<1x8x128xf32> to vector<8x128xf32>
      %77 = vector.shape_cast %74 : vector<8x128xf32> to vector<1x8x128xf32>
      tpu.vector_store %arg4[%c0_41, %c0_42, %c0_43], %77 {strides = array<i32>} : memref<1x8x128xf32, #tpu.memory_space<vmem>>, vector<1x8x128xf32>,
    } else {
    }
    %c0 = arith.constant 0 : index
    %c0_1 = arith.constant 0 : index
    %3 = vector.load %arg3[%c0, %c0_1] : memref<1x128xi32, #tpu.memory_space<vmem>>, vector<1x128xi32>
    %c0_i32_2 = arith.constant 0 : i32
    %4 = vector.broadcast %c0_i32_2 : i32 to vector<1x128xi32>
    %5 = arith.cmpi sgt, %3, %4 : vector<1x128xi32>
    %c0_i32_3 = arith.constant 0 : i32
    %6 = vector.broadcast %c0_i32_3 : i32 to vector<1x128xi32>
    %7 = arith.cmpi eq, %3, %6 : vector<1x128xi32>
    %c0_4 = arith.constant 0 : index
    %c0_5 = arith.constant 0 : index
    %8 = vector.load %arg2[%c0_4, %c0_5] : memref<7x128xf32, #tpu.memory_space<vmem>>, vector<3x128xf32>
    %c3 = arith.constant 3 : index
    %c0_6 = arith.constant 0 : index
    %9 = vector.load %arg2[%c3, %c0_6] : memref<7x128xf32, #tpu.memory_space<vmem>>, vector<2x128xf32>
    %c5 = arith.constant 5 : index
    %c0_7 = arith.constant 0 : index
    %10 = vector.load %arg2[%c5, %c0_7] : memref<7x128xf32, #tpu.memory_space<vmem>>, vector<2x128xf32>
    %cst = arith.constant dense<0xFF800000> : vector<128xf32>
    %11 = vector.multi_reduction <maximumf>, %8, %cst [0] : vector<3x128xf32> to vector<128xf32>
    %12 = vector.shape_cast %11 : vector<128xf32> to vector<1x128xf32>
    %13 = vector.broadcast %12 : vector<1x128xf32> to vector<3x128xf32>
    %14 = arith.subf %8, %13 : vector<3x128xf32>
    %15 = math.exp %14 : vector<3x128xf32>
    %cst_8 = arith.constant dense<0.000000e+00> : vector<128xf32>
    %16 = vector.multi_reduction <add>, %15, %cst_8 [0] : vector<3x128xf32> to vector<128xf32>
    %17 = vector.shape_cast %16 : vector<128xf32> to vector<1x128xf32>
    %18 = math.log %17 : vector<1x128xf32>
    %19 = arith.addf %12, %18 : vector<1x128xf32>
    %20 = tpu.iota {dimensions = array<i32: 0>} : vector<3x128xi32>
    %21 = vector.broadcast %3 : vector<1x128xi32> to vector<3x128xi32>
    %22 = arith.cmpi eq, %20, %21 : vector<3x128xi32>
    %cst_9 = arith.constant 0.000000e+00 : f32
    %23 = vector.broadcast %cst_9 : f32 to vector<3x128xf32>
    %24 = arith.select %22, %8, %23 : vector<3x128xi1>, vector<3x128xf32>
    %cst_10 = arith.constant dense<0.000000e+00> : vector<128xf32>
    %25 = vector.multi_reduction <add>, %24, %cst_10 [0] : vector<3x128xf32> to vector<128xf32>
    %26 = vector.shape_cast %25 : vector<128xf32> to vector<1x128xf32>
    %27 = arith.subf %19, %26 : vector<1x128xf32>
    %28 = arith.subf %9, %10 : vector<2x128xf32>
    %29 = math.absf %28 : vector<2x128xf32>
    %cst_11 = arith.constant 1.000000e+00 : f32
    %30 = vector.broadcast %cst_11 : f32 to vector<2x128xf32>
    %31 = arith.cmpf olt, %29, %30 : vector<2x128xf32>
    %cst_12 = arith.constant 5.000000e-01 : f32
    %32 = vector.broadcast %cst_12 : f32 to vector<2x128xf32>
    %33 = arith.mulf %32, %28 : vector<2x128xf32>
    %34 = arith.mulf %33, %28 : vector<2x128xf32>
    %cst_13 = arith.constant 5.000000e-01 : f32
    %35 = vector.broadcast %cst_13 : f32 to vector<2x128xf32>
    %36 = arith.subf %29, %35 : vector<2x128xf32>
    %37 = arith.select %31, %34, %36 : vector<2x128xi1>, vector<2x128xf32>
    %c0_14 = arith.constant 0 : index
    %c0_15 = arith.constant 0 : index
    %c0_16 = arith.constant 0 : index
    %38 = vector.load %arg4[%c0_14, %c0_15, %c0_16] : memref<1x8x128xf32, #tpu.memory_space<vmem>>, vector<1x1x128xf32>
    %39 = vector.shape_cast %38 : vector<1x1x128xf32> to vector<1x128xf32>
    %40 = arith.extui %5 : vector<1x128xi1> to vector<1x128xi32>
    %41 = arith.sitofp %40 : vector<1x128xi32> to vector<1x128xf32>
    %42 = arith.addf %39, %41 : vector<1x128xf32>
    %c0_17 = arith.constant 0 : index
    %c0_18 = arith.constant 0 : index
    %c0_19 = arith.constant 0 : index
    %43 = vector.load %arg4[%c0_17, %c0_18, %c0_19] : memref<1x8x128xf32, #tpu.memory_space<vmem>>, vector<1x1x128xf32>
    %44 = vector.shape_cast %43 : vector<1x1x128xf32> to vector<1x128xf32>
    %45 = vector.shape_cast %42 : vector<1x128xf32> to vector<1x1x128xf32>
    tpu.vector_store %arg4[%c0_17, %c0_18, %c0_19], %45 {strides = array<i32>} : memref<1x8x128xf32, #tpu.memory_space<vmem>>, vector<1x1x128xf32>,
    %c0_20 = arith.constant 0 : index
    %c1 = arith.constant 1 : index
    %c0_21 = arith.constant 0 : index
    %46 = vector.load %arg4[%c0_20, %c1, %c0_21] : memref<1x8x128xf32, #tpu.memory_space<vmem>>, vector<1x1x128xf32>
    %47 = vector.shape_cast %46 : vector<1x1x128xf32> to vector<1x128xf32>
    %cst_22 = arith.constant 0.000000e+00 : f32
    %48 = vector.broadcast %cst_22 : f32 to vector<1x128xf32>
    %49 = arith.select %5, %27, %48 : vector<1x128xi1>, vector<1x128xf32>
    %50 = arith.addf %47, %49 : vector<1x128xf32>
    %c0_23 = arith.constant 0 : index
    %c1_24 = arith.constant 1 : index
    %c0_25 = arith.constant 0 : index
    %51 = vector.load %arg4[%c0_23, %c1_24, %c0_25] : memref<1x8x128xf32, #tpu.memory_space<vmem>>, vector<1x1x128xf32>
    %52 = vector.shape_cast %51 : vector<1x1x128xf32> to vector<1x128xf32>
    %53 = vector.shape_cast %50 : vector<1x128xf32> to vector<1x1x128xf32>
    tpu.vector_store %arg4[%c0_23, %c1_24, %c0_25], %53 {strides = array<i32>} : memref<1x8x128xf32, #tpu.memory_space<vmem>>, vector<1x1x128xf32>,
    %c0_26 = arith.constant 0 : index
    %c2 = arith.constant 2 : index
    %c0_27 = arith.constant 0 : index
    %54 = vector.load %arg4[%c0_26, %c2, %c0_27] : memref<1x8x128xf32, #tpu.memory_space<vmem>>, vector<1x1x128xf32>
    %55 = vector.shape_cast %54 : vector<1x1x128xf32> to vector<1x128xf32>
    %cst_28 = arith.constant 0.000000e+00 : f32
    %56 = vector.broadcast %cst_28 : f32 to vector<1x128xf32>
    %57 = arith.select %7, %27, %56 : vector<1x128xi1>, vector<1x128xf32>
    %58 = arith.addf %55, %57 : vector<1x128xf32>
    %c0_29 = arith.constant 0 : index
    %c2_30 = arith.constant 2 : index
    %c0_31 = arith.constant 0 : index
    %59 = vector.load %arg4[%c0_29, %c2_30, %c0_31] : memref<1x8x128xf32, #tpu.memory_space<vmem>>, vector<1x1x128xf32>
    %60 = vector.shape_cast %59 : vector<1x1x128xf32> to vector<1x128xf32>
    %61 = vector.shape_cast %58 : vector<1x128xf32> to vector<1x1x128xf32>
    tpu.vector_store %arg4[%c0_29, %c2_30, %c0_31], %61 {strides = array<i32>} : memref<1x8x128xf32, #tpu.memory_space<vmem>>, vector<1x1x128xf32>,
    %c0_32 = arith.constant 0 : index
    %c3_33 = arith.constant 3 : index
    %c0_34 = arith.constant 0 : index
    %62 = vector.load %arg4[%c0_32, %c3_33, %c0_34] : memref<1x8x128xf32, #tpu.memory_space<vmem>>, vector<1x1x128xf32>
    %63 = vector.shape_cast %62 : vector<1x1x128xf32> to vector<1x128xf32>
    %cst_35 = arith.constant 0.000000e+00 : f32
    %64 = vector.shape_cast %5 : vector<1x128xi1> to vector<1x128xi1>
    %65 = vector.broadcast %64 : vector<1x128xi1> to vector<2x128xi1>
    %66 = vector.broadcast %cst_35 : f32 to vector<2x128xf32>
    %67 = arith.select %65, %37, %66 : vector<2x128xi1>, vector<2x128xf32>
    %cst_36 = arith.constant dense<0.000000e+00> : vector<128xf32>
    %68 = vector.multi_reduction <add>, %67, %cst_36 [0] : vector<2x128xf32> to vector<128xf32>
    %69 = vector.shape_cast %68 : vector<128xf32> to vector<1x128xf32>
    %70 = arith.addf %63, %69 : vector<1x128xf32>
    %c0_37 = arith.constant 0 : index
    %c3_38 = arith.constant 3 : index
    %c0_39 = arith.constant 0 : index
    %71 = vector.load %arg4[%c0_37, %c3_38, %c0_39] : memref<1x8x128xf32, #tpu.memory_space<vmem>>, vector<1x1x128xf32>
    %72 = vector.shape_cast %71 : vector<1x1x128xf32> to vector<1x128xf32>
    %73 = vector.shape_cast %70 : vector<1x128xf32> to vector<1x1x128xf32>
    tpu.vector_store %arg4[%c0_37, %c3_38, %c0_39], %73 {strides = array<i32>} : memref<1x8x128xf32, #tpu.memory_space<vmem>>, vector<1x1x128xf32>,
    return
  }
  func.func @transform_0(%arg0: i32, %arg1: i32) -> (i32, i32) {
    %c1_i32 = arith.constant 1 : i32
    %0 = arith.muli %arg0, %c1_i32 : i32
    %1 = arith.addi %0, %arg1 : i32
    %c0_i32 = arith.constant 0 : i32
    %c0_i32_0 = arith.constant 0 : i32
    return %c0_i32, %1 : i32, i32
  }
  func.func @transform_1(%arg0: i32, %arg1: i32) -> (i32, i32) {
    %c1_i32 = arith.constant 1 : i32
    %0 = arith.muli %arg0, %c1_i32 : i32
    %1 = arith.addi %0, %arg1 : i32
    %c0_i32 = arith.constant 0 : i32
    %c0_i32_0 = arith.constant 0 : i32
    return %c0_i32, %1 : i32, i32
  }
  func.func @transform_2(%arg0: i32, %arg1: i32) -> (i32, i32, i32) {
    %c0_i32 = arith.constant 0 : i32
    %c0_i32_0 = arith.constant 0 : i32
    %c0_i32_1 = arith.constant 0 : i32
    return %arg0, %c0_i32, %c0_i32_0 : i32, i32, i32
  }
}

</mosaic_0001>

<bundles_post_ra>
// kernel: dosed_simple_loss.1
= control target key start
LH: loop header
LB: loop body
LE: loop exit
PB: predicated region body
PF: predicated region fallthrough
CT: control target
= control target key end

     0   :  { %vm53_vm0 = vcmask 1042432   ;;  %v143_v0 = vmov 0.0   ;;  %v144_v8 = vmov 0   ;;  %vm111_vm4 = vcmask 1041408   ;;  %s215_s0 = inlined_call_operand.vmem [shape: f32[7,128], index: 0, kind: input, shape index: {}]   ;;  %s216_s1 = inlined_call_operand.vmem [shape: s32[1,128], index: 1, kind: input, shape index: {}]   ;;  %s217_s2 = inlined_call_operand.vmem [shape: f32[1,8,128], index: 2, kind: output, shape index: {}]  }
   0x1   :  { %46 = vst [vmem:[%s217_s2] sm:$0xff] %v143_v0  ;;  %v166_v1 = vld [vmem:[%s216_s1] sm:$0x1]  ;;  %v51_v3 = vld [vmem:[%s215_s0 + $0x3] sm:$0x3]  ;;  %v52_v4 = vld [vmem:[%s215_s0 + $0x5] sm:$0x3]  ;;  %v74_v21 = vlaneseq }
   0x2   :  { %v50_v2 = vld [vmem:[%s215_s0] sm:$0x7]  ;;  %vm48_vm1 = vcmp.gt.s32.totalorder %v166_v1, 0  ;;  %v87_v7 = vsub.f32 %v51_v3, %v52_v4  ;;  %vm49_vm6 = vcmp.eq.s32.totalorder %v166_v1, 0 }
   0x3   :  { %v54_v5 = vsel %vm53_vm0, %v50_v2, -inf  ;;  %v95_v9 = vsel %vm48_vm1, 1, %v144_v8  ;;  %v135_v14 = vsel %vm48_vm1, 1.0, %v143_v0  ;;  %v75_v27 = vshrl.u32 %v74_v21, 7  ;;  %v138_v28 = vld [vmem:[%s216_s1] ss:$0 sm:$0xff] }
   0x4   :  { %v55_v6 = vrot.slane %v54_v5, 4  ;;  %v108_v10 = vperm.slane %v95_v9, 0  ;;  %v88_v11 = vand.u32 2147483647, %v87_v7  ;;  %v90_v12 = vmul.f32 0.5, %v87_v7 }
   0x5   :  { %vm77_vm5 = vcmp.eq.s32.totalorder %v75_v27, %v138_v28 }
   0x6   :  { %v56_v13 = vmax.f32 %v54_v5, %v55_v6  ;;  %vm89_vm2 = vcmp.lt.f32.partialorder %v88_v11, 1.0  ;;  %v91_v15 = vmul.f32 %v90_v12, %v87_v7  ;;  %v134_v16 = vadd.f32 -0.5, %v88_v11 }
   0x7   :  { %vm109_vm3 = vcmp.eq.s32.totalorder %v108_v10, 1  ;;  %v78_v36 = vsel %vm77_vm5, %v50_v2, 0.0 }
   0x8   :  { %v94_v17 = vld [vmem:[%s217_s2] sm:$0x1]  ;;  %v57_v18 = vrot.slane %v56_v13, 2  ;;  %v93_v19 = vsel %vm89_vm2, %v91_v15, %v134_v16  ;;  %v107_v37 = vld [vmem:[%s217_s2 + $0x3] sm:$0x1]  ;;  %v79_v39 = vsel %vm53_vm0, %v78_v36, 0.0 }
   0x9   :  { %v97_v20 = vadd.f32 %v135_v14, %v94_v17  ;;  %v110_v22 = vsel %vm109_vm3, %v93_v19, 0.0  ;;  %v80_v42 = vrot.slane %v79_v39, 4  ;;  %v99_v59 = vld [vmem:[%s217_s2 + $0x1] sm:$0x1]  ;;  %v103_v60 = vld [vmem:[%s217_s2 + $0x2] sm:$0x1] }
   0xa   :  { %v58_v23 = vmax.f32 %v56_v13, %v57_v18  ;;  %v112_v24 = vsel %vm111_vm4, %v110_v22, 0.0 }
   0xb   :  { %98 = vst [vmem:[%s217_s2] sm:$0x1] %v97_v20  ;;  %v113_v25 = vrot.slane %v112_v24, 4  ;;  %v81_v46 = vadd.f32 %v80_v42, %v79_v39 }
   0xc   :  { %v59_v26 = vrot.slane %v58_v23, 1 }
   0xd   :  { %v114_v29 = vadd.f32 %v113_v25, %v112_v24  ;;  %v82_v49 = vrot.slane %v81_v46, 2 }
   0xe   :  { %v60_v30 = vmax.f32 %v58_v23, %v59_v26 }
   0xf   :  { %v115_v32 = vrot.slane %v114_v29, 2  ;;  %v83_v52 = vadd.f32 %v82_v49, %v81_v46 }
  0x10   :  { %v61_v31 = vsub.f32 %v50_v2, %v60_v30 }
  0x11   :  { %v116_v34 = vadd.f32 %v115_v32, %v114_v29  ;;  %v84_v53 = vrot.slane %v83_v52, 1 }
  0x12   :  { %v62_v33 = vmul.f32 1.442695, %v61_v31 }
  0x13   :  { %v117_v35 = vrot.slane %v116_v34, 1  ;;  %v85_v56 = vadd.f32 %v84_v53, %v83_v52 }
  0x14   :  { %139 = vpow2.f32 %v62_v33 }
  0x15   :  { %v118_v38 = vadd.f32 %v117_v35, %v116_v34 }
  0x17   :  { %v119_v40 = vadd.f32 %v118_v38, %v107_v37 }
  0x19   :  { %120 = vst [vmem:[%s217_s2 + $0x3] sm:$0x1] %v119_v40 }
  0x1a   :  { %v140_v41 = vpop.eup %139 }
  0x1b   :  { %v64_v43 = vsel %vm53_vm0, %v140_v41, 0.0 }
  0x1c   :  { %v65_v44 = vrot.slane %v64_v43, 4 }
  0x1e   :  { %v66_v45 = vadd.f32 %v65_v44, %v64_v43 }
  0x20   :  { %v67_v47 = vrot.slane %v66_v45, 2 }
  0x22   :  { %v68_v48 = vadd.f32 %v67_v47, %v66_v45 }
  0x24   :  { %v69_v50 = vrot.slane %v68_v48, 1 }
  0x26   :  { %v70_v51 = vadd.f32 %v69_v50, %v68_v48 }
  0x28   :  { %141 = vlog2.f32 %v70_v51 }
  0x2e   :  { %v142_v54 = vpop.eup %141 }
  0x2f   :  { %v72_v55 = vmul.f32 0.6931472, %v142_v54 }
  0x31   :  { %v73_v57 = vadd.f32 %v72_v55, %v60_v30 }
  0x33   :  { %v86_v58 = vsub.f32 %v73_v57, %v85_v56 }
  0x35   :  { %v100_v61 = vsel %vm48_vm1, %v86_v58, 0.0  ;;  %v104_v62 = vsel %vm49_vm6, %v86_v58, 0.0 }
  0x36   :  { %v101_v63 = vadd.f32 %v100_v61, %v99_v59  ;;  %v105_v0 = vadd.f32 %v104_v62, %v103_v60 }
  0x38   :  { %102 = vst [vmem:[%s217_s2 + $0x1] sm:$0x1] %v101_v63 }
  0x39   :  { %106 = vst [vmem:[%s217_s2 + $0x2] sm:$0x1] %v105_v0 }

</bundles_post_ra>
